<compile_context>
chip_gen: v7x
topology: tpu7x:2x2x1
jax: 0.10.0
libtpu: 0.0.40
codegen_flags: <defaults>
</compile_context>

<pallas_src>
import functools
import math

import jax
import jax.numpy as jnp
import numpy as np
from jax import lax
from jax.experimental import pallas as pl
from jax.experimental.pallas import tpu as pltpu


def _us_feature_kernel(x_ref,
                       wf1_ref, b1_ref, wf2_ref, b2_ref,
                       wf3_ref, b3_ref, wf4_ref, b4_ref,
                       o_ref, *, seg_len):
  """One grid step: TB batch elements packed as (C, TB*seg_len)."""
  lt = x_ref.shape[-1]                      # TB * seg_len (static)
  nseg = lt // seg_len
  lane_aligned = (lt % 128 == 0)

  # Per-lane "position within batch element" index, built without integer
  # div/mod: tile a small iota nseg times along the lane axis.
  base = lax.broadcasted_iota(jnp.int32, (1, seg_len), 1)
  col = jnp.concatenate([base] * nseg, axis=1)        # (1, lt)

  def shift_right(h, s):
    # shifted[:, i] = h[:, i - s] within each length-seg_len batch segment,
    # zero for the first s positions of every segment.
    if lane_aligned:
      rolled = pltpu.roll(h, shift=s, axis=-1)        # XLU lane rotate (slot is idle)
    else:
      # Tiny / non-128-aligned tile: plain shifted copy.
      rolled = jnp.concatenate(
          [jnp.zeros((h.shape[0], s), h.dtype), h[:, :lt - s]], axis=1)
    return jnp.where(col >= s, rolled, 0.0)

  def stacked(h):
    # Tap order matches the folded weights: [tap0 <-> shift 2, tap1 <-> shift 1,
    # tap2 <-> shift 0].
    return jnp.concatenate([shift_right(h, 2), shift_right(h, 1), h], axis=0)

  def conv_block(h, wf_ref, b_ref):
    # Single folded matmul per layer, f32 accumulation, bias added once.
    y = jnp.dot(wf_ref[...], stacked(h), preferred_element_type=jnp.float32)
    return jnp.tanh(y + b_ref[...])

  h = conv_block(x_ref[...], wf1_ref, b1_ref)         # (64, lt)
  h = conv_block(h, wf2_ref, b2_ref)                  # (32, lt)
  h = conv_block(h, wf3_ref, b3_ref)                  # (16, lt)

  # Final layer (C_out == 1): VPU broadcast-multiply + sublane reduce instead of
  # an M=1 MXU matmul.
  s4 = stacked(h)                                     # (48, lt)
  y4 = jnp.sum(wf4_ref[...] * s4, axis=0, keepdims=True) + b4_ref[...]
  o_ref[...] = jnp.tanh(y4)                           # (1, lt)


def _pick_batch_tile(batch, length, target_lanes=1024):
  """Pick TB so each grid step sees ~target_lanes lanes and TB*length is either
  the full (padded) lane extent or a multiple of 128 (lane-dense stores)."""
  step = 128 // math.gcd(length, 128)     # smallest TB with TB*length % 128 == 0
  if batch * length <= target_lanes or step >= batch:
    return batch                          # single block: full-dim escape of the 128 rule
  per = max(1, target_lanes // (step * length))
  tb = step * per
  return min(tb, (batch // step) * step)


def us_feature_extractor(x, params, *, target_lanes=1024):
  """x: (B, C_in, L) float32.  params: list of (w, b) with PyTorch shapes
  w: (C_out, C_in, 3), b: (C_out,).  Returns (B, L) float32 (eval mode)."""
  B, C_in, L = x.shape

  tb = _pick_batch_tile(B, L, target_lanes)
  n_blocks = -(-B // tb)                  # cdiv
  Bp = n_blocks * tb
  if Bp != B:
    x = jnp.pad(x, ((0, Bp - B), (0, 0), (0, 0)))

  # (B, C, L) -> (C, B, L) -> (C, B*L): channels on sublanes, batch*length on lanes.
  x_flat = jnp.transpose(x, (1, 0, 2)).reshape(C_in, Bp * L)

  # Fold the 3 conv taps into one matmul per layer:
  #   W_f[o, k*C_in + c] = w[o, c, k]     (tap-major columns).
  kernel_args = []
  n_layers = len(params)
  for li, (w, b) in enumerate(params):
    c_out, c_in, k = w.shape
    wf = jnp.transpose(w, (0, 2, 1)).reshape(c_out, k * c_in)   # (C_out, 3*C_in)
    if li == n_layers - 1:
      kernel_args.append(jnp.transpose(wf))                     # (3*C_in, 1) for VPU path
    else:
      kernel_args.append(wf)
    kernel_args.append(b[:, None])                              # (C_out, 1)

  lt = tb * L
  in_specs = [pl.BlockSpec((C_in, lt), lambda i: (0, i))]
  in_specs += [pl.BlockSpec(a.shape, lambda i: (0, 0)) for a in kernel_args]
  out_spec = pl.BlockSpec((1, lt), lambda i: (0, i))

  out_flat = pl.pallas_call(
      functools.partial(_us_feature_kernel, seg_len=L),
      out_shape=jax.ShapeDtypeStruct((1, Bp * L), jnp.float32),
      grid_spec=pltpu.PrefetchScalarGridSpec(
          num_scalar_prefetch=0,
          grid=(n_blocks,),
          in_specs=in_specs,
          out_specs=out_spec,
      ),
      compiler_params=pltpu.CompilerParams(
          dimension_semantics=("parallel",)),
  )(x_flat, *kernel_args)

  return out_flat.reshape(Bp, L)[:B]


def _init_params(key, input_channels):
  """Deterministic init mimicking PyTorch Conv1d default (uniform +/- 1/sqrt(fan_in))."""
  layer_dims = [(input_channels, 64), (64, 32), (32, 16), (16, 1)]
  params = []
  for (c_in, c_out) in layer_dims:
    key, kw, kb = jax.random.split(key, 3)
    bound = 1.0 / np.sqrt(c_in * 3)
    w = jax.random.uniform(kw, (c_out, c_in, 3), jnp.float32, -bound, bound)
    b = jax.random.uniform(kb, (c_out,), jnp.float32, -bound, bound)
    params.append((w, b))
  return params


def _reference(x, params):
  """Pure-JAX reference of the PyTorch forward (eval mode)."""
  h = x
  for (w, b) in params:
    y = lax.conv_general_dilated(
        h, w, window_strides=(1,), padding=[(2, 0)],
        dimension_numbers=("NCH", "OIH", "NCH"))
    h = jnp.tanh(y + b[None, :, None])
  return jnp.squeeze(h, axis=1)            # (B, L) -- matches .squeeze() + [None,:] fixup


if __name__ == "__main__":
  key = jax.random.PRNGKey(0)
  B, C_in, L = 2, 4, 16                    # input_length=16, input_channels=4

  key, kx = jax.random.split(key)
  x = jax.random.normal(kx, (B, C_in, L), dtype=jnp.float32)

  params = _init_params(key, C_in)

  out = us_feature_extractor(x, params)
  out = jax.block_until_ready(out)

  ref = _reference(x, params)
  assert out.shape == (B, L), out.shape
  np.testing.assert_allclose(np.asarray(out), np.asarray(ref),
                             rtol=1e-5, atol=1e-5)
  print("KERNEL_OK")
</pallas_src>

<mosaic_0001>
module attributes {stable_mosaic.version = 11 : i64} {
  func.func @_us_feature_kernel(%arg0: i32, %arg1: memref<4x32xf32, #tpu.memory_space<vmem>>, %arg2: memref<64x12xf32, #tpu.memory_space<vmem>>, %arg3: memref<64x1xf32, #tpu.memory_space<vmem>>, %arg4: memref<32x192xf32, #tpu.memory_space<vmem>>, %arg5: memref<32x1xf32, #tpu.memory_space<vmem>>, %arg6: memref<16x96xf32, #tpu.memory_space<vmem>>, %arg7: memref<16x1xf32, #tpu.memory_space<vmem>>, %arg8: memref<48x1xf32, #tpu.memory_space<vmem>>, %arg9: memref<1x1xf32, #tpu.memory_space<vmem>>, %arg10: memref<1x32xf32, #tpu.memory_space<vmem>>) attributes {dimension_semantics = [#tpu.dimension_semantics<parallel>], iteration_bounds = array<i64: 1>, scalar_prefetch = 0 : i64, scratch_operands = 0 : i64, tpu.core_type = #tpu.core_type<tc>, window_params = [{transform_indices = @transform_0, window_bounds = array<i64: 4, 32>}, {pipeline_mode = #tpu.pipeline_mode<synchronous>, transform_indices = @transform_1, window_bounds = array<i64: 64, 12>}, {pipeline_mode = #tpu.pipeline_mode<synchronous>, transform_indices = @transform_2, window_bounds = array<i64: 64, 1>}, {pipeline_mode = #tpu.pipeline_mode<synchronous>, transform_indices = @transform_3, window_bounds = array<i64: 32, 192>}, {pipeline_mode = #tpu.pipeline_mode<synchronous>, transform_indices = @transform_4, window_bounds = array<i64: 32, 1>}, {pipeline_mode = #tpu.pipeline_mode<synchronous>, transform_indices = @transform_5, window_bounds = array<i64: 16, 96>}, {pipeline_mode = #tpu.pipeline_mode<synchronous>, transform_indices = @transform_6, window_bounds = array<i64: 16, 1>}, {pipeline_mode = #tpu.pipeline_mode<synchronous>, transform_indices = @transform_7, window_bounds = array<i64: 48, 1>}, {pipeline_mode = #tpu.pipeline_mode<synchronous>, transform_indices = @transform_8, window_bounds = array<i64: 1, 1>}, {transform_indices = @transform_9, window_bounds = array<i64: 1, 32>}]} {
    %0 = tpu.iota {dimensions = array<i32: 1>} : vector<1x16xi32>
    %1 = tpu.concatenate %0, %0 in 1 : vector<1x16xi32>, vector<1x16xi32> -> vector<1x32xi32>
    %c0 = arith.constant 0 : index
    %c0_0 = arith.constant 0 : index
    %2 = vector.load %arg1[%c0, %c0_0] : memref<4x32xf32, #tpu.memory_space<vmem>>, vector<4x32xf32>
    %c0_1 = arith.constant 0 : index
    %c0_2 = arith.constant 0 : index
    %3 = vector.load %arg2[%c0_1, %c0_2] : memref<64x12xf32, #tpu.memory_space<vmem>>, vector<64x12xf32>
    %cst = arith.constant 0.000000e+00 : f32
    %4 = vector.broadcast %cst : f32 to vector<4x2xf32>
    %5 = vector.extract_strided_slice %2 {offsets = [0, 0], sizes = [4, 30], strides = [1, 1]} : vector<4x32xf32> to vector<4x30xf32>
    %6 = tpu.concatenate %4, %5 in 1 : vector<4x2xf32>, vector<4x30xf32> -> vector<4x32xf32>
    %c2_i32 = arith.constant 2 : i32
    %7 = vector.broadcast %c2_i32 : i32 to vector<1x32xi32>
    %8 = arith.cmpi sge, %1, %7 : vector<1x32xi32>
    %cst_3 = arith.constant 0.000000e+00 : f32
    %9 = vector.shape_cast %8 : vector<1x32xi1> to vector<1x32xi1>
    %10 = vector.broadcast %9 : vector<1x32xi1> to vector<4x32xi1>
    %11 = vector.broadcast %cst_3 : f32 to vector<4x32xf32>
    %12 = arith.select %10, %6, %11 : vector<4x32xi1>, vector<4x32xf32>
    %cst_4 = arith.constant 0.000000e+00 : f32
    %13 = vector.broadcast %cst_4 : f32 to vector<4x1xf32>
    %14 = vector.extract_strided_slice %2 {offsets = [0, 0], sizes = [4, 31], strides = [1, 1]} : vector<4x32xf32> to vector<4x31xf32>
    %15 = tpu.concatenate %13, %14 in 1 : vector<4x1xf32>, vector<4x31xf32> -> vector<4x32xf32>
    %c1_i32 = arith.constant 1 : i32
    %16 = vector.broadcast %c1_i32 : i32 to vector<1x32xi32>
    %17 = arith.cmpi sge, %1, %16 : vector<1x32xi32>
    %cst_5 = arith.constant 0.000000e+00 : f32
    %18 = vector.shape_cast %17 : vector<1x32xi1> to vector<1x32xi1>
    %19 = vector.broadcast %18 : vector<1x32xi1> to vector<4x32xi1>
    %20 = vector.broadcast %cst_5 : f32 to vector<4x32xf32>
    %21 = arith.select %19, %15, %20 : vector<4x32xi1>, vector<4x32xf32>
    %22 = tpu.concatenate %12, %21, %2 in 0 : vector<4x32xf32>, vector<4x32xf32>, vector<4x32xf32> -> vector<12x32xf32>
    %cst_6 = arith.constant dense<0.000000e+00> : vector<64x32xf32>
    %23 = tpu.matmul %3, %22, %cst_6 {dimension_numbers = #tpu.dot_dimension_numbers<[1], [0], [0], [1], [0, 0, 1, 1], [], []>} : vector<64x12xf32>, vector<12x32xf32>, vector<64x32xf32> -> vector<64x32xf32>
    %c0_7 = arith.constant 0 : index
    %c0_8 = arith.constant 0 : index
    %24 = vector.load %arg3[%c0_7, %c0_8] : memref<64x1xf32, #tpu.memory_space<vmem>>, vector<64x1xf32>
    %25 = vector.broadcast %24 : vector<64x1xf32> to vector<64x32xf32>
    %26 = arith.addf %23, %25 : vector<64x32xf32>
    %27 = math.tanh %26 : vector<64x32xf32>
    %c0_9 = arith.constant 0 : index
    %c0_10 = arith.constant 0 : index
    %28 = vector.load %arg4[%c0_9, %c0_10] : memref<32x192xf32, #tpu.memory_space<vmem>>, vector<32x192xf32>
    %cst_11 = arith.constant 0.000000e+00 : f32
    %29 = vector.broadcast %cst_11 : f32 to vector<64x2xf32>
    %30 = vector.extract_strided_slice %27 {offsets = [0, 0], sizes = [64, 30], strides = [1, 1]} : vector<64x32xf32> to vector<64x30xf32>
    %31 = tpu.concatenate %29, %30 in 1 : vector<64x2xf32>, vector<64x30xf32> -> vector<64x32xf32>
    %c2_i32_12 = arith.constant 2 : i32
    %32 = vector.broadcast %c2_i32_12 : i32 to vector<1x32xi32>
    %33 = arith.cmpi sge, %1, %32 : vector<1x32xi32>
    %cst_13 = arith.constant 0.000000e+00 : f32
    %34 = vector.shape_cast %33 : vector<1x32xi1> to vector<1x32xi1>
    %35 = vector.broadcast %34 : vector<1x32xi1> to vector<64x32xi1>
    %36 = vector.broadcast %cst_13 : f32 to vector<64x32xf32>
    %37 = arith.select %35, %31, %36 : vector<64x32xi1>, vector<64x32xf32>
    %cst_14 = arith.constant 0.000000e+00 : f32
    %38 = vector.broadcast %cst_14 : f32 to vector<64x1xf32>
    %39 = vector.extract_strided_slice %27 {offsets = [0, 0], sizes = [64, 31], strides = [1, 1]} : vector<64x32xf32> to vector<64x31xf32>
    %40 = tpu.concatenate %38, %39 in 1 : vector<64x1xf32>, vector<64x31xf32> -> vector<64x32xf32>
    %c1_i32_15 = arith.constant 1 : i32
    %41 = vector.broadcast %c1_i32_15 : i32 to vector<1x32xi32>
    %42 = arith.cmpi sge, %1, %41 : vector<1x32xi32>
    %cst_16 = arith.constant 0.000000e+00 : f32
    %43 = vector.shape_cast %42 : vector<1x32xi1> to vector<1x32xi1>
    %44 = vector.broadcast %43 : vector<1x32xi1> to vector<64x32xi1>
    %45 = vector.broadcast %cst_16 : f32 to vector<64x32xf32>
    %46 = arith.select %44, %40, %45 : vector<64x32xi1>, vector<64x32xf32>
    %47 = tpu.concatenate %37, %46, %27 in 0 : vector<64x32xf32>, vector<64x32xf32>, vector<64x32xf32> -> vector<192x32xf32>
    %cst_17 = arith.constant dense<0.000000e+00> : vector<32x32xf32>
    %48 = tpu.matmul %28, %47, %cst_17 {dimension_numbers = #tpu.dot_dimension_numbers<[1], [0], [0], [1], [0, 0, 1, 1], [], []>} : vector<32x192xf32>, vector<192x32xf32>, vector<32x32xf32> -> vector<32x32xf32>
    %c0_18 = arith.constant 0 : index
    %c0_19 = arith.constant 0 : index
    %49 = vector.load %arg5[%c0_18, %c0_19] : memref<32x1xf32, #tpu.memory_space<vmem>>, vector<32x1xf32>
    %50 = vector.broadcast %49 : vector<32x1xf32> to vector<32x32xf32>
    %51 = arith.addf %48, %50 : vector<32x32xf32>
    %52 = math.tanh %51 : vector<32x32xf32>
    %c0_20 = arith.constant 0 : index
    %c0_21 = arith.constant 0 : index
    %53 = vector.load %arg6[%c0_20, %c0_21] : memref<16x96xf32, #tpu.memory_space<vmem>>, vector<16x96xf32>
    %cst_22 = arith.constant 0.000000e+00 : f32
    %54 = vector.broadcast %cst_22 : f32 to vector<32x2xf32>
    %55 = vector.extract_strided_slice %52 {offsets = [0, 0], sizes = [32, 30], strides = [1, 1]} : vector<32x32xf32> to vector<32x30xf32>
    %56 = tpu.concatenate %54, %55 in 1 : vector<32x2xf32>, vector<32x30xf32> -> vector<32x32xf32>
    %c2_i32_23 = arith.constant 2 : i32
    %57 = vector.broadcast %c2_i32_23 : i32 to vector<1x32xi32>
    %58 = arith.cmpi sge, %1, %57 : vector<1x32xi32>
    %cst_24 = arith.constant 0.000000e+00 : f32
    %59 = vector.shape_cast %58 : vector<1x32xi1> to vector<1x32xi1>
    %60 = vector.broadcast %59 : vector<1x32xi1> to vector<32x32xi1>
    %61 = vector.broadcast %cst_24 : f32 to vector<32x32xf32>
    %62 = arith.select %60, %56, %61 : vector<32x32xi1>, vector<32x32xf32>
    %cst_25 = arith.constant 0.000000e+00 : f32
    %63 = vector.broadcast %cst_25 : f32 to vector<32x1xf32>
    %64 = vector.extract_strided_slice %52 {offsets = [0, 0], sizes = [32, 31], strides = [1, 1]} : vector<32x32xf32> to vector<32x31xf32>
    %65 = tpu.concatenate %63, %64 in 1 : vector<32x1xf32>, vector<32x31xf32> -> vector<32x32xf32>
    %c1_i32_26 = arith.constant 1 : i32
    %66 = vector.broadcast %c1_i32_26 : i32 to vector<1x32xi32>
    %67 = arith.cmpi sge, %1, %66 : vector<1x32xi32>
    %cst_27 = arith.constant 0.000000e+00 : f32
    %68 = vector.shape_cast %67 : vector<1x32xi1> to vector<1x32xi1>
    %69 = vector.broadcast %68 : vector<1x32xi1> to vector<32x32xi1>
    %70 = vector.broadcast %cst_27 : f32 to vector<32x32xf32>
    %71 = arith.select %69, %65, %70 : vector<32x32xi1>, vector<32x32xf32>
    %72 = tpu.concatenate %62, %71, %52 in 0 : vector<32x32xf32>, vector<32x32xf32>, vector<32x32xf32> -> vector<96x32xf32>
    %cst_28 = arith.constant dense<0.000000e+00> : vector<16x32xf32>
    %73 = tpu.matmul %53, %72, %cst_28 {dimension_numbers = #tpu.dot_dimension_numbers<[1], [0], [0], [1], [0, 0, 1, 1], [], []>} : vector<16x96xf32>, vector<96x32xf32>, vector<16x32xf32> -> vector<16x32xf32>
    %c0_29 = arith.constant 0 : index
    %c0_30 = arith.constant 0 : index
    %74 = vector.load %arg7[%c0_29, %c0_30] : memref<16x1xf32, #tpu.memory_space<vmem>>, vector<16x1xf32>
    %75 = vector.broadcast %74 : vector<16x1xf32> to vector<16x32xf32>
    %76 = arith.addf %73, %75 : vector<16x32xf32>
    %77 = math.tanh %76 : vector<16x32xf32>
    %cst_31 = arith.constant 0.000000e+00 : f32
    %78 = vector.broadcast %cst_31 : f32 to vector<16x2xf32>
    %79 = vector.extract_strided_slice %77 {offsets = [0, 0], sizes = [16, 30], strides = [1, 1]} : vector<16x32xf32> to vector<16x30xf32>
    %80 = tpu.concatenate %78, %79 in 1 : vector<16x2xf32>, vector<16x30xf32> -> vector<16x32xf32>
    %c2_i32_32 = arith.constant 2 : i32
    %81 = vector.broadcast %c2_i32_32 : i32 to vector<1x32xi32>
    %82 = arith.cmpi sge, %1, %81 : vector<1x32xi32>
    %cst_33 = arith.constant 0.000000e+00 : f32
    %83 = vector.shape_cast %82 : vector<1x32xi1> to vector<1x32xi1>
    %84 = vector.broadcast %83 : vector<1x32xi1> to vector<16x32xi1>
    %85 = vector.broadcast %cst_33 : f32 to vector<16x32xf32>
    %86 = arith.select %84, %80, %85 : vector<16x32xi1>, vector<16x32xf32>
    %cst_34 = arith.constant 0.000000e+00 : f32
    %87 = vector.broadcast %cst_34 : f32 to vector<16x1xf32>
    %88 = vector.extract_strided_slice %77 {offsets = [0, 0], sizes = [16, 31], strides = [1, 1]} : vector<16x32xf32> to vector<16x31xf32>
    %89 = tpu.concatenate %87, %88 in 1 : vector<16x1xf32>, vector<16x31xf32> -> vector<16x32xf32>
    %c1_i32_35 = arith.constant 1 : i32
    %90 = vector.broadcast %c1_i32_35 : i32 to vector<1x32xi32>
    %91 = arith.cmpi sge, %1, %90 : vector<1x32xi32>
    %cst_36 = arith.constant 0.000000e+00 : f32
    %92 = vector.shape_cast %91 : vector<1x32xi1> to vector<1x32xi1>
    %93 = vector.broadcast %92 : vector<1x32xi1> to vector<16x32xi1>
    %94 = vector.broadcast %cst_36 : f32 to vector<16x32xf32>
    %95 = arith.select %93, %89, %94 : vector<16x32xi1>, vector<16x32xf32>
    %96 = tpu.concatenate %86, %95, %77 in 0 : vector<16x32xf32>, vector<16x32xf32>, vector<16x32xf32> -> vector<48x32xf32>
    %c0_37 = arith.constant 0 : index
    %c0_38 = arith.constant 0 : index
    %97 = vector.load %arg8[%c0_37, %c0_38] : memref<48x1xf32, #tpu.memory_space<vmem>>, vector<48x1xf32>
    %98 = vector.broadcast %97 : vector<48x1xf32> to vector<48x32xf32>
    %99 = arith.mulf %98, %96 : vector<48x32xf32>
    %cst_39 = arith.constant dense<0.000000e+00> : vector<32xf32>
    %100 = vector.multi_reduction <add>, %99, %cst_39 [0] : vector<48x32xf32> to vector<32xf32>
    %101 = vector.shape_cast %100 : vector<32xf32> to vector<1x32xf32>
    %c0_40 = arith.constant 0 : index
    %c0_41 = arith.constant 0 : index
    %102 = vector.load %arg9[%c0_40, %c0_41] : memref<1x1xf32, #tpu.memory_space<vmem>>, vector<1x1xf32>
    %103 = vector.broadcast %102 : vector<1x1xf32> to vector<1x32xf32>
    %104 = arith.addf %101, %103 : vector<1x32xf32>
    %105 = math.tanh %104 : vector<1x32xf32>
    %c0_42 = arith.constant 0 : index
    %c0_43 = arith.constant 0 : index
    %106 = vector.load %arg10[%c0_42, %c0_43] : memref<1x32xf32, #tpu.memory_space<vmem>>, vector<1x32xf32>
    tpu.vector_store %arg10[%c0_42, %c0_43], %105 {strides = array<i32>} : memref<1x32xf32, #tpu.memory_space<vmem>>, vector<1x32xf32>,
    return
  }
  func.func @transform_0(%arg0: i32) -> (i32, i32) {
    %c0_i32 = arith.constant 0 : i32
    %c0_i32_0 = arith.constant 0 : i32
    return %c0_i32, %arg0 : i32, i32
  }
  func.func @transform_1(%arg0: i32) -> (i32, i32) {
    %c0_i32 = arith.constant 0 : i32
    %c0_i32_0 = arith.constant 0 : i32
    %c0_i32_1 = arith.constant 0 : i32
    return %c0_i32, %c0_i32_0 : i32, i32
  }
  func.func @transform_2(%arg0: i32) -> (i32, i32) {
    %c0_i32 = arith.constant 0 : i32
    %c0_i32_0 = arith.constant 0 : i32
    %c0_i32_1 = arith.constant 0 : i32
    return %c0_i32, %c0_i32_0 : i32, i32
  }
  func.func @transform_3(%arg0: i32) -> (i32, i32) {
    %c0_i32 = arith.constant 0 : i32
    %c0_i32_0 = arith.constant 0 : i32
    %c0_i32_1 = arith.constant 0 : i32
    return %c0_i32, %c0_i32_0 : i32, i32
  }
  func.func @transform_4(%arg0: i32) -> (i32, i32) {
    %c0_i32 = arith.constant 0 : i32
    %c0_i32_0 = arith.constant 0 : i32
    %c0_i32_1 = arith.constant 0 : i32
    return %c0_i32, %c0_i32_0 : i32, i32
  }
  func.func @transform_5(%arg0: i32) -> (i32, i32) {
    %c0_i32 = arith.constant 0 : i32
    %c0_i32_0 = arith.constant 0 : i32
    %c0_i32_1 = arith.constant 0 : i32
    return %c0_i32, %c0_i32_0 : i32, i32
  }
  func.func @transform_6(%arg0: i32) -> (i32, i32) {
    %c0_i32 = arith.constant 0 : i32
    %c0_i32_0 = arith.constant 0 : i32
    %c0_i32_1 = arith.constant 0 : i32
    return %c0_i32, %c0_i32_0 : i32, i32
  }
  func.func @transform_7(%arg0: i32) -> (i32, i32) {
    %c0_i32 = arith.constant 0 : i32
    %c0_i32_0 = arith.constant 0 : i32
    %c0_i32_1 = arith.constant 0 : i32
    return %c0_i32, %c0_i32_0 : i32, i32
  }
  func.func @transform_8(%arg0: i32) -> (i32, i32) {
    %c0_i32 = arith.constant 0 : i32
    %c0_i32_0 = arith.constant 0 : i32
    %c0_i32_1 = arith.constant 0 : i32
    return %c0_i32, %c0_i32_0 : i32, i32
  }
  func.func @transform_9(%arg0: i32) -> (i32, i32) {
    %c0_i32 = arith.constant 0 : i32
    %c0_i32_0 = arith.constant 0 : i32
    return %c0_i32, %arg0 : i32, i32
  }
}

</mosaic_0001>

<bundles_post_ra>
// kernel: tpu_custom_call.1
= control target key start
LH: loop header
LB: loop body
LE: loop exit
PB: predicated region body
PF: predicated region fallthrough
CT: control target
= control target key end

     0   :  { %s1439_s0 = inlined_call_operand.vmem [shape: f32[4,32], index: 0, kind: input, shape index: {}]   ;;  %s1440_s1 = inlined_call_operand.vmem [shape: f32[64,12], index: 1, kind: input, shape index: {}]   ;;  %s1441_s2 = inlined_call_operand.vmem [shape: f32[64,1], index: 2, kind: input, shape index: {}]   ;;  %s1442_s3 = inlined_call_operand.vmem [shape: f32[32,192], index: 3, kind: input, shape index: {}]   ;;  %s1443_s4 = inlined_call_operand.vmem [shape: f32[32,1], index: 4, kind: input, shape index: {}]   ;;  %s1444_s5 = inlined_call_operand.vmem [shape: f32[16,96], index: 5, kind: input, shape index: {}]   ;;  %s1445_s6 = inlined_call_operand.vmem [shape: f32[16,1], index: 6, kind: input, shape index: {}]   ;;  %s1446_s7 = inlined_call_operand.vmem [shape: f32[48,1], index: 7, kind: input, shape index: {}]   ;;  %s1447_s8 = inlined_call_operand.<no memory space> [shape: f32[1,1], index: 8, kind: input, shape index: {}]   ;;  %s1448_s9 = inlined_call_operand.hbm [shape: f32[1,32], index: 9, kind: output, shape index: {}]  }
   0x1   :  { %v14_v0 = vstv %s1447_s8 }
   0x2   :  { %15 = vst [vmem:[#allocation2] sm:$0x1] %v14_v0 }
   0x3   :  { %v35_v1 = vlaneseq  ;;  %v41_v2 = vld [vmem:[%s1439_s0] sm:$0xf]  ;;  %s1055_s13 = smov 2   ;;  %v1056_v3 = vmov 0  }
   0x4   :  { %51 = vrot.lane.b32.xlu1 %v41_v2, %s1055_s13  ;;  %940 = vset.pattern.permute.xlu0 %v1056_v3 }
   0x5   :  { %v36_v4 = vand.u32 127, %v35_v1  ;;  %939 = vset.pattern.permute.xlu1 %v1056_v3 }
   0x6   :  { %16 = vsyncpa [#allocation4], 0  ;;  %s1057_s14 = smov 16   ;;  %v42_v5 = vld [vmem:[%s1440_s1] sm:$0xff]  ;;  %vm130_vm0 = vcmask 97280   ;;  %s1058_s8 = smov 1  }
   0x7   :  { %37 = vrot.lane.b32.xlu0 %v36_v4, %s1057_s14  ;;  %811 = vmatprep.mubr.msk.f32.mxu0 %vm130_vm0, %v42_v5  ;;  %v82_v6 = vld [vmem:[%s1441_s2] sm:$0xff]  ;;  %v83_v7 = vld [vmem:[%s1441_s2 + $0x8] sm:$0xff]  ;;  %v84_v8 = vld [vmem:[%s1441_s2 + $0x10] sm:$0xff]  ;;  %v59_v14 = vshrl.u32 %v35_v1, 7  ;;  %vm39_vm1 = vcmask 130048   ;;  %vm67_vm4 = vcmask 7168  }
   0x8   :  { %92 = vperm.xlu1 %939, %v82_v6   ;;  %v86_v9 = vld [vmem:[%s1441_s2 + $0x20] sm:$0xff]  ;;  %v85_v10 = vld [vmem:[%s1441_s2 + $0x18] sm:$0xff]  ;;  %v88_v11 = vld [vmem:[%s1441_s2 + $0x30] sm:$0xff]  ;;  %vm54_vm5 = vcmask 15360   ;;  %vm80_vm8 = vcmask 1043456   ;;  %vm1059_vm9 = vmmov 1  }
   0x9   :  { %v87_v12 = vld [vmem:[%s1441_s2 + $0x28] sm:$0xff]  ;;  %v89_v13 = vld [vmem:[%s1441_s2 + $0x38] sm:$0xff]  ;;  %v1148_v15 = vsub.s32 0, %v59_v14  ;;  %vm851_vm10 = vmpackc.low %vm80_vm8, %vm1059_vm9  ;;  %v1060_v57 = vmov 0.0|0.0   ;;  %vm390_vm11 = vcmask 523264   ;;  %vm550_vm14 = vcmask 785408  }
   0xa   :  { %v43_v33 = vld [vmem:[%s1440_s1 + $0x8] sm:$0xff]  ;;  %v44_v34 = vld [vmem:[%s1440_s1 + $0x10] sm:$0xff]  ;;  %v45_v35 = vld [vmem:[%s1440_s1 + $0x18] sm:$0xff]  ;;  %856 = vmatprep.subr.bf16.mxu1 %v1060_v57  ;;  %vm698_vm15 = vcmask 261120  }
   0xb   :  { %64 = vrot.lane.b32.xlu0 %v41_v2, %s1058_s8  ;;  %v46_v36 = vld [vmem:[%s1440_s1 + $0x20] sm:$0xff]  ;;  %v47_v37 = vld [vmem:[%s1440_s1 + $0x28] sm:$0xff]  ;;  %v48_v38 = vld [vmem:[%s1440_s1 + $0x30] sm:$0xff] }
   0xc   :  { %102 = vperm.xlu1 %939, %v84_v8   ;;  %v49_v39 = vld [vmem:[%s1440_s1 + $0x38] sm:$0xff] }
   0xf   :  { %97 = vperm.xlu0 %940, %v83_v7  }
  0x10   :  { %107 = vperm.xlu1 %939, %v85_v10  }
  0x13   :  { %112 = vperm.xlu0 %940, %v86_v9  }
  0x14   :  { %117 = vperm.xlu1 %939, %v87_v12  }
  0x17   :  { %122 = vperm.xlu0 %940, %v88_v11  }
  0x18   :  { %127 = vperm.xlu1 %939, %v89_v13  }
  0x76   :  { %v52_v20 = vpop.permute.xlu1 %51 }
  0x77   :  { %v55_v27 = vsel %vm54_vm5, 0.0, %v52_v20  ;;  %v367_v20 = vld [vmem:[%s1443_s4 + $0x8] sm:$0xff] }
  0x79   :  { %v38_v16 = vpop.permute.xlu0 %37 }
  0x7a   :  { %v40_v17 = vsel %vm39_vm1, %v36_v4, %v38_v16 }
  0x7b   :  { %vm56_vm2 = vcmp.ge.s32.totalorder %v40_v17, 2  ;;  %vm69_vm3 = vcmp.ge.s32.totalorder %v40_v17, 1 }
  0x7c   :  { %v57_v18 = vsel %vm56_vm2, 1, %v1056_v3  ;;  %v70_v19 = vsel %vm69_vm3, 1, %v1056_v3 }
  0x7d   :  { %v61_v21 = vrot.slane %v57_v18, %v1148_v15  ;;  %v74_v22 = vrot.slane %v70_v19, %v1148_v15  ;;  %v65_v23 = vpop.permute.xlu0 %64  ;;  %v366_v18 = vld [vmem:[%s1443_s4] sm:$0xff]  ;;  %v368_v19 = vld [vmem:[%s1443_s4 + $0x10] sm:$0xff] }
  0x7e   :  { %v68_v24 = vsel %vm67_vm4, 0.0, %v65_v23 }
  0x7f   :  { %vm1153_vm6 = vcmp.eq.s32.totalorder %v61_v21, 1  ;;  %vm1157_vm7 = vcmp.eq.s32.totalorder %v74_v22, 1  ;;  %v369_v21 = vld [vmem:[%s1443_s4 + $0x18] sm:$0xff]  ;;  %v271_v22 = vld [vmem:[%s1442_s3 + $0x8] sm:$0xff] }
  0x80   :  { %v76_v28 = vsel %vm1157_vm7, %v68_v24, 0.0  ;;  %v63_v30 = vsel %vm1153_vm6, %v55_v27, 0.0  ;;  %769 = vmatprep.mubr.msk.f32.mxu1 %vm390_vm11, %v271_v22  ;;  %vm1256_vm12 = vmpackc.low %vm1153_vm6, %vm1153_vm6 }
  0x81   :  { %v78_v29 = vrot.slane %v76_v28, 4  ;;  %vm1283_vm13 = vmpackc.low %vm1157_vm7, %vm1157_vm7 }
  0x83   :  { %v81_v31 = vsel %vm80_vm8, %v63_v30, %v78_v29 }
  0x84   :  { %v850_v32 = vpack.c.bf16 %v41_v2, %v81_v31 }
  0x86   :  { %852 = vmatprep.subr.msk.bf16.mxu0 %vm851_vm10, %v850_v32 }
  0x87   :  { %855 = vmatpush3.bf16.msk.msra.mxu0 %vm851_vm10, %v850_v32  ;;  %v93_v40 = vpop.permute.xlu1 %92  ;;  %v493_v32 = vld [vmem:[%s1444_s5 + $0x8] sm:$0xff] }
  0x8a   :  { %812 = vmatmul.mubr.msk.f32.vlgmr.msra.gmra.mrb[0].mxu0 %vm130_vm0, %v43_v33 }
  0x8b   :  { %814 = vmatprep.mubr.msk.f32.mxu0 %vm130_vm0, %v44_v34  ;;  %v103_v41 = vpop.permute.xlu1 %102 }
  0x8e   :  { %815 = vmatmul.mubr.msk.f32.gmra.mrb[2].mxu0 %vm130_vm0, %v45_v35  ;;  %v98_v42 = vpop.permute.xlu0 %97 }
  0x8f   :  { %817 = vmatprep.mubr.msk.f32.mxu0 %vm130_vm0, %v46_v36  ;;  %v108_v43 = vpop.permute.xlu1 %107 }
  0x92   :  { %818 = vmatmul.mubr.msk.f32.gmra.mrb[4].mxu0 %vm130_vm0, %v47_v37  ;;  %v113_v53 = vpop.permute.xlu0 %112 }
  0x93   :  { %820 = vmatprep.mubr.msk.f32.mxu0 %vm130_vm0, %v48_v38  ;;  %v118_v51 = vpop.permute.xlu1 %117 }
  0x96   :  { %821 = vmatmul.mubr.msk.f32.gmra.mrb[6].mxu0 %vm130_vm0, %v49_v39  ;;  %v123_v62 = vpop.permute.xlu0 %122  ;;  %vm728_vm0 = vcmask 253952  }
  0x97   :  { %v128_v59 = vpop.permute.xlu1 %127 }
 0x15d   :  { %v813_v44 = vpop.f32.mrb[0].mxu0 }
 0x15e   :  { %v229_v45 = vadd.f32 %v813_v44, %v98_v42  ;;  %v223_v46 = vpop.f32.mrb[1].mxu0 }
 0x15f   :  { %v224_v47 = vadd.f32 %v223_v46, %v93_v40 }
 0x160   :  { %1001 = vtanh.f32 %v229_v45 }
 0x161   :  { %1003 = vtanh.f32 %v224_v47  ;;  %v816_v48 = vpop.f32.mrb[2].mxu0 }
 0x162   :  { %v239_v49 = vadd.f32 %v816_v48, %v108_v43  ;;  %v233_v50 = vpop.f32.mrb[3].mxu0 }
 0x163   :  { %v234_v52 = vadd.f32 %v233_v50, %v103_v41 }
 0x164   :  { %1005 = vtanh.f32 %v239_v49 }
 0x165   :  { %1007 = vtanh.f32 %v234_v52  ;;  %v819_v54 = vpop.f32.mrb[4].mxu0 }
 0x166   :  { %v249_v55 = vadd.f32 %v819_v54, %v118_v51  ;;  %v243_v56 = vpop.f32.mrb[5].mxu0 }
 0x167   :  { %v244_v58 = vadd.f32 %v243_v56, %v113_v53 }
 0x168   :  { %1009 = vtanh.f32 %v249_v55 }
 0x169   :  { %1011 = vtanh.f32 %v244_v58  ;;  %v822_v60 = vpop.f32.mrb[6].mxu0 }
 0x16a   :  { %v1195_v61 = vpop.eup %1001  ;;  %v259_v63 = vadd.f32 %v822_v60, %v128_v59  ;;  %v253_v0 = vpop.f32.mrb[7].mxu0 }
 0x16b   :  { %v1197_v1 = vpop.eup %1003  ;;  %v254_v2 = vadd.f32 %v253_v0, %v123_v62 }
 0x16c   :  { %1013 = vtanh.f32 %v259_v63  ;;  %v941_v3 = vpack.i.bf16 %v1195_v61, %v1197_v1  ;;  %v889_v4 = vpack.c.bf16 %v1195_v61, %v1197_v1  ;;  %v270_v61 = vld [vmem:[%s1442_s3] sm:$0xff]  ;;  %v273_v1 = vld [vmem:[%s1442_s3 + $0x18] sm:$0xff] }
 0x16d   :  { %1015 = vtanh.f32 %v254_v2 }
 0x16e   :  { %v1203_v5 = vpop.eup %1005  ;;  %942 = vrot.lane.b32.xlu0 %v941_v3, %s1055_s13 }
 0x16f   :  { %v1206_v6 = vpop.eup %1007 }
 0x170   :  { %v946_v7 = vpack.i.bf16 %v1203_v5, %v1206_v6  ;;  %v892_v8 = vpack.c.bf16 %v1203_v5, %v1206_v6  ;;  %v274_v5 = vld [vmem:[%s1442_s3 + $0x20] sm:$0xff]  ;;  %v277_v6 = vld [vmem:[%s1442_s3 + $0x38] sm:$0xff] }
 0x172   :  { %v1212_v9 = vpop.eup %1009  ;;  %947 = vrot.lane.b32.xlu1 %v946_v7, %s1055_s13 }
 0x173   :  { %v1215_v10 = vpop.eup %1011 }
 0x174   :  { %v951_v11 = vpack.i.bf16 %v1212_v9, %v1215_v10  ;;  %v895_v12 = vpack.c.bf16 %v1212_v9, %v1215_v10 }
 0x176   :  { %v1221_v13 = vpop.eup %1013  ;;  %952 = vrot.lane.b32.xlu0 %v951_v11, %s1055_s13 }
 0x177   :  { %v1224_v14 = vpop.eup %1015 }
 0x178   :  { %v956_v16 = vpack.i.bf16 %v1221_v13, %v1224_v14  ;;  %v898_v17 = vpack.c.bf16 %v1221_v13, %v1224_v14 }
 0x17a   :  { %962 = vrot.lane.b32.xlu0 %v941_v3, %s1058_s8  ;;  %957 = vrot.lane.b32.xlu1 %v956_v16, %s1055_s13 }
 0x17e   :  { %972 = vrot.lane.b32.xlu0 %v951_v11, %s1058_s8  ;;  %967 = vrot.lane.b32.xlu1 %v946_v7, %s1058_s8 }
 0x182   :  { %372 = vperm.xlu0 %940, %v366_v18   ;;  %977 = vrot.lane.b32.xlu1 %v956_v16, %s1058_s8 }
 0x186   :  { %382 = vperm.xlu0 %940, %v368_v19   ;;  %377 = vperm.xlu1 %939, %v367_v20  }
 0x18a   :  { %387 = vperm.xlu1 %939, %v369_v21  }
 0x1e0   :  { %v943_v23 = vpop.permute.xlu0 %942 }
 0x1e1   :  { %v945_v24 = vunpack.i.h.bf16 %v943_v23  ;;  %v944_v27 = vunpack.i.l.bf16 %v943_v23 }
 0x1e3   :  { %v311_v28 = vsel %vm54_vm5, 0.0, %v945_v24  ;;  %v310_v29 = vsel %vm54_vm5, 0.0, %v944_v27 }
 0x1e4   :  { %v948_v30 = vpop.permute.xlu1 %947  ;;  %v857_v31 = vpack.c.bf16 %v311_v28, %v310_v29 }
 0x1e5   :  { %v950_v33 = vunpack.i.h.bf16 %v948_v30  ;;  %v949_v34 = vunpack.i.l.bf16 %v948_v30 }
 0x1e6   :  { %859 = vmatpush1.bf16.msk.msra.mxu1 %vm1256_vm12, %v857_v31 }
 0x1e7   :  { %v313_v35 = vsel %vm54_vm5, 0.0, %v950_v33  ;;  %v312_v36 = vsel %vm54_vm5, 0.0, %v949_v34  ;;  %860 = vmatprep.subr.bf16.mxu1 %v1060_v57 }
 0x1e8   :  { %v861_v37 = vpack.c.bf16 %v313_v35, %v312_v36  ;;  %v953_v38 = vpop.permute.xlu0 %952 }
 0x1e9   :  { %v955_v39 = vunpack.i.h.bf16 %v953_v38  ;;  %v954_v40 = vunpack.i.l.bf16 %v953_v38 }
 0x1ea   :  { %863 = vmatpush1.bf16.msk.msra.mxu1 %vm1256_vm12, %v861_v37 }
 0x1eb   :  { %v315_v41 = vsel %vm54_vm5, 0.0, %v955_v39  ;;  %v314_v42 = vsel %vm54_vm5, 0.0, %v954_v40  ;;  %864 = vmatprep.subr.bf16.mxu1 %v1060_v57 }
 0x1ec   :  { %v865_v43 = vpack.c.bf16 %v315_v41, %v314_v42  ;;  %v958_v44 = vpop.permute.xlu1 %957  ;;  %v963_v45 = vpop.permute.xlu0 %962 }
 0x1ed   :  { %v960_v46 = vunpack.i.h.bf16 %v958_v44  ;;  %v959_v47 = vunpack.i.l.bf16 %v958_v44  ;;  %v965_v48 = vunpack.i.h.bf16 %v963_v45  ;;  %v964_v49 = vunpack.i.l.bf16 %v963_v45  ;;  %v538_v44 = vld [vmem:[%s1445_s6] sm:$0xff] }
 0x1ee   :  { %867 = vmatpush1.bf16.msk.msra.mxu1 %vm1256_vm12, %v865_v43 }
 0x1ef   :  { %v317_v50 = vsel %vm54_vm5, 0.0, %v960_v46  ;;  %v316_v51 = vsel %vm54_vm5, 0.0, %v959_v47  ;;  %868 = vmatprep.subr.bf16.mxu1 %v1060_v57  ;;  %v351_v54 = vsel %vm67_vm4, 0.0, %v965_v48  ;;  %v350_v55 = vsel %vm67_vm4, 0.0, %v964_v49  ;;  %v656_v47 = vld [vmem:[%s1446_s7] sm:$0xff]  ;;  %v539_v48 = vld [vmem:[%s1445_s6 + $0x8] sm:$0xff] }
 0x1f0   :  { %v869_v52 = vpack.c.bf16 %v317_v50, %v316_v51  ;;  %v968_v53 = vpop.permute.xlu1 %967  ;;  %v973_v59 = vpop.permute.xlu0 %972  ;;  %v873_v60 = vpack.c.bf16 %v351_v54, %v350_v55  ;;  %v658_v49 = vld [vmem:[%s1446_s7 + $0x10] sm:$0xff]  ;;  %v657_v50 = vld [vmem:[%s1446_s7 + $0x8] sm:$0xff]  ;;  %v660_v51 = vld [vmem:[%s1446_s7 + $0x20] sm:$0xff] }
 0x1f1   :  { %v970_v56 = vunpack.i.h.bf16 %v968_v53  ;;  %v969_v58 = vunpack.i.l.bf16 %v968_v53  ;;  %v975_v2 = vunpack.i.h.bf16 %v973_v59  ;;  %v974_v3 = vunpack.i.l.bf16 %v973_v59  ;;  %v659_v53 = vld [vmem:[%s1446_s7 + $0x18] sm:$0xff] }
 0x1f2   :  { %871 = vmatpush1.bf16.msk.msra.mxu1 %vm1256_vm12, %v869_v52  ;;  %v492_v52 = vld [vmem:[%s1444_s5] sm:$0xff]  ;;  %s1061_s5 = smov [#allocation3]  }
 0x1f3   :  { %872 = vmatprep.subr.bf16.mxu1 %v1060_v57  ;;  %v353_v63 = vsel %vm67_vm4, 0.0, %v970_v56  ;;  %v352_v0 = vsel %vm67_vm4, 0.0, %v969_v58  ;;  %v355_v16 = vsel %vm67_vm4, 0.0, %v975_v2  ;;  %v354_v18 = vsel %vm67_vm4, 0.0, %v974_v3  ;;  %847 = vmatprep.mubr.msk.f32.mxu0 %vm550_vm14, %v492_v52 }
 0x1f4   :  { %v978_v7 = vpop.permute.xlu1 %977  ;;  %v877_v11 = vpack.c.bf16 %v353_v63, %v352_v0  ;;  %v881_v21 = vpack.c.bf16 %v355_v16, %v354_v18 }
 0x1f5   :  { %v980_v19 = vunpack.i.h.bf16 %v978_v7  ;;  %v979_v20 = vunpack.i.l.bf16 %v978_v7 }
 0x1f6   :  { %875 = vmatpush1.bf16.msk.msra.mxu1 %vm1283_vm13, %v873_v60 }
 0x1f7   :  { %876 = vmatprep.subr.bf16.mxu1 %v1060_v57  ;;  %v357_v22 = vsel %vm67_vm4, 0.0, %v980_v19  ;;  %v356_v23 = vsel %vm67_vm4, 0.0, %v979_v20 }
 0x1f8   :  { %v885_v24 = vpack.c.bf16 %v357_v22, %v356_v23 }
 0x1fa   :  { %879 = vmatpush1.bf16.msk.msra.mxu1 %vm1283_vm13, %v877_v11 }
 0x1fb   :  { %880 = vmatprep.subr.bf16.mxu1 %v1060_v57 }
 0x1fe   :  { %883 = vmatpush1.bf16.msk.msra.mxu1 %vm1283_vm13, %v881_v21 }
 0x1ff   :  { %884 = vmatprep.subr.bf16.mxu1 %v1060_v57 }
 0x201   :  { %v373_v10 = vpop.permute.xlu0 %372 }
 0x202   :  { %887 = vmatpush1.bf16.msk.msra.mxu1 %vm1283_vm13, %v885_v24 }
 0x203   :  { %888 = vmatprep.subr.bf16.mxu1 %v1060_v57 }
 0x205   :  { %v378_v14 = vpop.permute.xlu1 %377  ;;  %v383_v30 = vpop.permute.xlu0 %382 }
 0x206   :  { %890 = vmatpush1.bf16.msra.mxu1 %v889_v4  ;;  %v272_v4 = vld [vmem:[%s1442_s3 + $0x10] sm:$0xff] }
 0x207   :  { %891 = vmatprep.subr.bf16.mxu1 %v1060_v57 }
 0x209   :  { %v388_v34 = vpop.permute.xlu1 %387 }
 0x20a   :  { %893 = vmatpush1.bf16.msra.mxu1 %v892_v8  ;;  %v276_v8 = vld [vmem:[%s1442_s3 + $0x30] sm:$0xff] }
 0x20b   :  { %894 = vmatprep.subr.bf16.mxu1 %v1060_v57 }
 0x20e   :  { %896 = vmatpush1.bf16.msra.mxu1 %v895_v12 }
 0x20f   :  { %897 = vmatprep.subr.bf16.mxu1 %v1060_v57  ;;  %v275_v57 = vld [vmem:[%s1442_s3 + $0x28] sm:$0xff] }
 0x212   :  { %899 = vmatpush1.bf16.msra.mxu1 %v898_v17 }
 0x215   :  { %468 = vmatmul.mubr.f32.vlgmr.msra.gmra.mrb[0].mxu1 %v270_v61 }
 0x216   :  { %770 = vmatprep.mubr.msk.f32.mxu1 %vm390_vm11, %v273_v1 }
 0x219   :  { %473 = vmatmul.mubr.f32.gmra.mrb[2].mxu1 %v272_v4 }
 0x21a   :  { %771 = vmatprep.mubr.msk.f32.mxu1 %vm390_vm11, %v275_v57 }
 0x21d   :  { %478 = vmatmul.mubr.f32.gmra.mrb[4].mxu1 %v274_v5 }
 0x21e   :  { %772 = vmatprep.mubr.msk.f32.mxu1 %vm390_vm11, %v277_v6 }
 0x221   :  { %483 = vmatmul.mubr.f32.gmra.mrb[6].mxu1 %v276_v8 }
 0x2e8   :  { %v469_v9 = vpop.f32.mrb[0].mxu1 }
 0x2e9   :  { %v471_v12 = vpop.f32.mrb[1].mxu1  ;;  %v470_v13 = vadd.f32 %v469_v9, %v373_v10 }
 0x2eb   :  { %1017 = vtanh.f32 %v470_v13 }
 0x2ec   :  { %v474_v17 = vpop.f32.mrb[2].mxu1 }
 0x2ed   :  { %v475_v27 = vadd.f32 %v474_v17, %v378_v14  ;;  %v476_v28 = vpop.f32.mrb[3].mxu1  ;;  %v661_v14 = vld [vmem:[%s1446_s7 + $0x28] sm:$0xff]  ;;  %v716_v17 = vld [vmem:[#allocation2] sm:$0x1]  ;;  %s736_s7 = sshll.u32 %s1061_s5, 4  ;;  %s737_s7 = int_to_ptr.vmem [resolvable:$true] %s736_s7 }
 0x2ee   :  { %p1036_p1 = scmp.lt.s32.totalorder %s737_s7, %s737_s7 }
 0x2ef   :  { %1019 = vtanh.f32 %v475_v27 }
 0x2f0   :  { %v479_v29 = vpop.f32.mrb[4].mxu1 }
 0x2f1   :  { %v481_v31 = vpop.f32.mrb[5].mxu1  ;;  %v480_v33 = vadd.f32 %v479_v29, %v383_v30 }
 0x2f3   :  { %1021 = vtanh.f32 %v480_v33 }
 0x2f4   :  { %v484_v35 = vpop.f32.mrb[6].mxu1 }
 0x2f5   :  { %v485_v36 = vadd.f32 %v484_v35, %v388_v34  ;;  %v486_v37 = vpop.f32.mrb[7].mxu1  ;;  %v1018_v38 = vpop.eup %1017 }
 0x2f7   :  { %1023 = vtanh.f32 %v485_v36 }
 0x2f9   :  { %v1020_v39 = vpop.eup %1019 }
 0x2fa   :  { %v981_v40 = vpack.i.bf16 %v1020_v39, %v1018_v38  ;;  %v924_v41 = vpack.c.bf16 %v1020_v39, %v1018_v38 }
 0x2fc   :  { %982 = vrot.lane.b32.xlu0 %v981_v40, %s1055_s13 }
 0x2fd   :  { %v1022_v42 = vpop.eup %1021 }
 0x300   :  { %992 = vrot.lane.b32.xlu0 %v981_v40, %s1058_s8 }
 0x301   :  { %v1024_v43 = vpop.eup %1023 }
 0x302   :  { %v986_v45 = vpack.i.bf16 %v1024_v43, %v1022_v42  ;;  %v928_v46 = vpack.c.bf16 %v1024_v43, %v1022_v42 }
 0x304   :  { %987 = vrot.lane.b32.xlu1 %v986_v45, %s1055_s13  ;;  %542 = vperm.xlu0 %940, %v538_v44  }
 0x308   :  { %997 = vrot.lane.b32.xlu1 %v986_v45, %s1058_s8  ;;  %664 = vperm.xlu0 %940, %v656_v47  }
 0x30c   :  { %547 = vperm.xlu1 %939, %v539_v48   ;;  %674 = vperm.xlu0 %940, %v658_v49  }
 0x310   :  { %669 = vperm.xlu1 %939, %v657_v50   ;;  %684 = vperm.xlu0 %940, %v660_v51  }
 0x314   :  { %679 = vperm.xlu1 %939, %v659_v53  }
 0x36e   :  { %v983_v54 = vpop.permute.xlu0 %982 }
 0x36f   :  { %v985_v55 = vunpack.i.h.bf16 %v983_v54  ;;  %v984_v56 = vunpack.i.l.bf16 %v983_v54 }
 0x371   :  { %v511_v58 = vsel %vm54_vm5, 0.0, %v985_v55  ;;  %v510_v59 = vsel %vm54_vm5, 0.0, %v984_v56 }
 0x372   :  { %v900_v60 = vpack.c.bf16 %v511_v58, %v510_v59  ;;  %v993_v63 = vpop.permute.xlu0 %992 }
 0x373   :  { %v995_v0 = vunpack.i.h.bf16 %v993_v63  ;;  %v994_v2 = vunpack.i.l.bf16 %v993_v63 }
 0x374   :  { %902 = vmatprep.subr.msk.bf16.mxu0 %vm1256_vm12, %v900_v60 }
 0x375   :  { %905 = vmatpush3.bf16.msk.msra.mxu0 %vm1256_vm12, %v900_v60  ;;  %v531_v16 = vsel %vm67_vm4, 0.0, %v995_v0  ;;  %v530_v18 = vsel %vm67_vm4, 0.0, %v994_v2 }
 0x376   :  { %v988_v3 = vpop.permute.xlu1 %987  ;;  %v912_v61 = vpack.c.bf16 %v531_v16, %v530_v18 }
 0x377   :  { %v990_v7 = vunpack.i.h.bf16 %v988_v3  ;;  %v989_v11 = vunpack.i.l.bf16 %v988_v3 }
 0x379   :  { %v513_v19 = vsel %vm54_vm5, 0.0, %v990_v7  ;;  %v512_v20 = vsel %vm54_vm5, 0.0, %v989_v11 }
 0x37a   :  { %v906_v21 = vpack.c.bf16 %v513_v19, %v512_v20  ;;  %v998_v22 = vpop.permute.xlu1 %997 }
 0x37b   :  { %v1000_v23 = vunpack.i.h.bf16 %v998_v22  ;;  %v999_v24 = vunpack.i.l.bf16 %v998_v22 }
 0x37c   :  { %908 = vmatprep.subr.msk.bf16.mxu0 %vm1256_vm12, %v906_v21 }
 0x37d   :  { %v533_v1 = vsel %vm67_vm4, 0.0, %v1000_v23  ;;  %v532_v4 = vsel %vm67_vm4, 0.0, %v999_v24  ;;  %911 = vmatpush3.bf16.msk.msra.mxu0 %vm1256_vm12, %v906_v21 }
 0x37e   :  { %914 = vmatprep.subr.msk.bf16.mxu0 %vm1283_vm13, %v912_v61  ;;  %v918_v57 = vpack.c.bf16 %v533_v1, %v532_v4 }
 0x381   :  { %917 = vmatpush3.bf16.msk.msra.mxu0 %vm1283_vm13, %v912_v61 }
 0x382   :  { %920 = vmatprep.subr.msk.bf16.mxu0 %vm1283_vm13, %v918_v57 }
 0x383   :  { %v543_v8 = vpop.permute.xlu0 %542 }
 0x385   :  { %923 = vmatpush3.bf16.msk.msra.mxu0 %vm1283_vm13, %v918_v57 }
 0x386   :  { %925 = vmatprep.subr.bf16.mxu0 %v924_v41 }
 0x387   :  { %v665_v27 = vpop.permute.xlu0 %664 }
 0x389   :  { %927 = vmatpush3.bf16.msra.mxu0 %v924_v41 }
 0x38a   :  { %929 = vmatprep.subr.bf16.mxu0 %v928_v46 }
 0x38b   :  { %v548_v5 = vpop.permute.xlu1 %547  ;;  %v675_v29 = vpop.permute.xlu0 %674 }
 0x38d   :  { %931 = vmatpush3.bf16.msra.mxu0 %v928_v46 }
 0x38f   :  { %v670_v28 = vpop.permute.xlu1 %669  ;;  %v685_v31 = vpop.permute.xlu0 %684 }
 0x390   :  { %848 = vmatmul.mubr.msk.f32.vlgmr.msra.gmra.mrb[8].mxu0 %vm550_vm14, %v493_v32 }
 0x393   :  { %v680_v30 = vpop.permute.xlu1 %679 }
 0x463   :  { %v849_v6 = vpop.f32.mrb[8].mxu0 }
 0x464   :  { %v629_v9 = vadd.f32 %v849_v6, %v548_v5  ;;  %v623_v10 = vpop.f32.mrb[9].mxu0 }
 0x465   :  { %v624_v12 = vadd.f32 %v623_v10, %v543_v8 }
 0x466   :  { %1025 = vtanh.f32 %v629_v9 }
 0x467   :  { %1027 = vtanh.f32 %v624_v12 }
 0x470   :  { %v1026_v62 = vpop.eup %1025 }
 0x471   :  { %v1028_v13 = vpop.eup %1027  ;;  %638 = vrot.lane.b32.xlu1 %v1026_v62, %s1055_s13 }
 0x472   :  { %636 = vrot.lane.b32.xlu0 %v1028_v13, %s1055_s13  ;;  %v696_v54 = vmul.f32 %v1028_v13, %v685_v31  ;;  %s1031_s13 = scalar_lea.vmem %s737_s7, 16 }
 0x473   :  { %p1032_p0 = scmp.ne.s32.totalorder %s737_s7, %s1031_s13 }
 0x474   :  { %v706_v59 = vsel %vm698_vm15, %v696_v54, 0.0 }
 0x475   :  { %646 = vrot.lane.b32.xlu1 %v1028_v13, %s1058_s8 }
 0x476   :  { %689 = vperm.xlu0 %940, %v661_v14  }
 0x479   :  { %648 = vrot.lane.b32.xlu1 %v1026_v62, %s1058_s8  ;;  %s1035_s8 = scalar_lea.vmem %s737_s7, 32 }
 0x47a   :  { %719 = vperm.xlu0 %940, %v716_v17   ;;  %p1037_p2 = scmp.lt.s32.totalorder %s1035_s8, %s1031_s13 }
 0x47c   :  { %p1038_p3 = por %p1037_p2, %p1036_p1 }
 0x47e   :  { %p1039_p4 = pnand %p1038_p3, %p1032_p0 }
 0x4e3   :  { %v639_v33 = vpop.permute.xlu1 %638 }
 0x4e4   :  { %v643_v34 = vsel %vm54_vm5, 0.0, %v639_v33  ;;  %v637_v35 = vpop.permute.xlu0 %636 }
 0x4e5   :  { %v645_v36 = vsel %vm1153_vm6, %v643_v34, 0.0  ;;  %v642_v37 = vsel %vm54_vm5, 0.0, %v637_v35 }
 0x4e6   :  { %v693_v38 = vmul.f32 %v670_v28, %v645_v36  ;;  %v644_v39 = vsel %vm1153_vm6, %v642_v37, 0.0 }
 0x4e7   :  { %v692_v40 = vmul.f32 %v665_v27, %v644_v39  ;;  %v647_v41 = vpop.permute.xlu1 %646 }
 0x4e8   :  { %v652_v42 = vsel %vm67_vm4, 0.0, %v647_v41  ;;  %v700_v44 = vsel %vm698_vm15, %v693_v38, 0.0 }
 0x4e9   :  { %v654_v43 = vsel %vm1157_vm7, %v652_v42, 0.0  ;;  %v699_v45 = vsel %vm698_vm15, %v692_v40, 0.0 }
 0x4ea   :  { %v694_v46 = vmul.f32 %v675_v29, %v654_v43  ;;  %v701_v49 = vadd.f32 %v700_v44, %v699_v45 }
 0x4eb   :  { %v649_v47 = vpop.permute.xlu1 %648 }
 0x4ec   :  { %v653_v48 = vsel %vm67_vm4, 0.0, %v649_v47  ;;  %v702_v50 = vsel %vm698_vm15, %v694_v46, 0.0 }
 0x4ed   :  { %v655_v25 = vsel %vm1157_vm7, %v653_v48, 0.0  ;;  %v703_v53 = vadd.f32 %v702_v50, %v701_v49 }
 0x4ee   :  { %v695_v51 = vmul.f32 %v680_v30, %v655_v25 }
 0x4f0   :  { %v704_v52 = vsel %vm698_vm15, %v695_v51, 0.0 }
 0x4f1   :  { %v705_v55 = vadd.f32 %v704_v52, %v703_v53 }
 0x4f3   :  { %v707_v60 = vadd.f32 %v706_v59, %v705_v55 }
 0x4f5   :  { %v690_v56 = vpop.permute.xlu0 %689 }
 0x4f6   :  { %v697_v58 = vmul.f32 %v1026_v62, %v690_v56 }
 0x4f8   :  { %v708_v63 = vsel %vm698_vm15, %v697_v58, 0.0 }
 0x4f9   :  { %v709_v0 = vadd.f32 %v708_v63, %v707_v60  ;;  %v720_v11 = vpop.permute.xlu0 %719 }
 0x4fa   :  { %v725_v19 = vrot.slane %v720_v11, %v1148_v15 }
 0x4fb   :  { %v710_v2 = vrot.slane %v709_v0, 4 }
 0x4fd   :  { %v711_v3 = vadd.f32 %v710_v2, %v709_v0 }
 0x4ff   :  { %v712_v26 = vrot.slane %v711_v3, 2 }
 0x501   :  { %v713_v7 = vadd.f32 %v712_v26, %v711_v3 }
 0x503   :  { %v714_v16 = vrot.slane %v713_v7, 1 }
 0x505   :  { %v715_v18 = vadd.f32 %v714_v16, %v713_v7 }
 0x507   :  { %v726_v20 = vadd.f32 %v725_v19, %v715_v18 }
 0x509   :  { %1029 = vtanh.f32 %v726_v20 }
 0x513   :  { %v1030_v21 = vpop.eup %1029 }
 0x514   :  { %729 = vst.msk [vmem:[#allocation3] sm:$0x1] %vm728_vm0, %v1030_v21 }
 0x515   :  { %1042 = shalt.err (!%p1039_p4)
}
 0x516   :  { %s1043_s20 = scalar_lea.hbm %s1448_s9, 16 }
 0x517   :  { %p1044_p5 = scmp.ne.s32.totalorder %s1448_s9, %s1043_s20  ;;  %p1047_p6 = scmp.lt.u32.totalorder %s1043_s20, %s1448_s9 }
 0x519   :  { %p1049_p7 = pnand %p1047_p6, %p1044_p5 }
 0x51b   :  { %1052 = shalt.err (!%p1049_p7)
}
 0x51c   :  { %739 = dma.vmem_to_hbm [thread:$0]  %s737_s7, 16, %s1448_s9, [#allocation4]  }
 0x51d   :  { %1053 = dma.done.wait [#allocation4], 16  }
 0x51e   :  { %1054 = vsyncadd [#allocation4], 4294967280 }
 0x51f   :  { %743 = vsyncpa [#allocation4], 1 }

</bundles_post_ra>
